<compile_context>
chip_gen: v7x
topology: tpu7x:2x2x1
jax: 0.10.0
libtpu: 0.0.40
codegen_flags: <defaults>
</compile_context>

<pallas_src>
import functools

import jax
import jax.numpy as jnp
from jax.experimental import pallas as pl
from jax.experimental.pallas import tpu as pltpu

LANE = 128  # padded hidden / output width (one full vreg lane extent)


def dqn_kernel(x_ref, w1_ref, w2_ref, w3_ref, b_ref, o_ref):
    # Layer 1: x @ W1 + b1, ReLU   (bf16 operands, f32 MXU accumulation)
    h = jnp.dot(x_ref[...], w1_ref[...], preferred_element_type=jnp.float32)
    h = jnp.maximum(h + b_ref[0:1, :], 0.0)

    # Layer 2: Linear + ReLU
    h = jnp.dot(h.astype(jnp.bfloat16), w2_ref[...],
                preferred_element_type=jnp.float32)
    h = jnp.maximum(h + b_ref[1:2, :], 0.0)

    # Layer 3: Linear (Q-values, no activation)
    q = jnp.dot(h.astype(jnp.bfloat16), w3_ref[...],
                preferred_element_type=jnp.float32)
    o_ref[...] = (q + b_ref[2:3, :]).astype(o_ref.dtype)


def _round_up(n, m):
    return ((n + m - 1) // m) * m


def _pad2(a, rows, cols):
    return jnp.pad(a, ((0, rows - a.shape[0]), (0, cols - a.shape[1])))


@functools.partial(jax.jit, static_argnames=("tm",))
def dqn_forward(x, w1, b1, w2, b2, w3, b3, *, tm=256):
    batch, input_dim = x.shape
    hidden_dim = w1.shape[1]
    output_dim = w3.shape[1]

    # ---- Lane-dense, zero-padded parameter layout (math stays exact) ------
    w1p = _pad2(w1, input_dim, LANE).astype(jnp.bfloat16)
    w2p = _pad2(w2, LANE, LANE).astype(jnp.bfloat16)
    w3p = _pad2(w3, LANE, LANE).astype(jnp.bfloat16)
    # One fused bias buffer: row 0 = b1, row 1 = b2, row 2 = b3 (f32, zero pad)
    bias = jnp.zeros((3, LANE), jnp.float32)
    bias = bias.at[0, :hidden_dim].set(b1.reshape(-1))
    bias = bias.at[1, :hidden_dim].set(b2.reshape(-1))
    bias = bias.at[2, :output_dim].set(b3.reshape(-1))

    # ---- Batch tiling ------------------------------------------------------
    tm = min(tm, _round_up(batch, 8))          # tile rows, multiple of 8
    batch_pad = _round_up(batch, tm)
    x_bf = jnp.pad(x, ((0, batch_pad - batch), (0, 0))).astype(jnp.bfloat16)
    grid = (batch_pad // tm,)

    # Parameters stay resident in VMEM across grid steps (constant index_map).
    resident = lambda a: pl.BlockSpec(a.shape, lambda i: (0, 0))

    flops = 2 * batch_pad * (input_dim * LANE + LANE * LANE + LANE * LANE)
    bytes_accessed = (x_bf.size * 2
                      + (w1p.size + w2p.size + w3p.size) * 2
                      + bias.size * 4
                      + batch_pad * LANE * 4)

    out = pl.pallas_call(
        dqn_kernel,
        out_shape=jax.ShapeDtypeStruct((batch_pad, LANE), jnp.float32),
        grid_spec=pltpu.PrefetchScalarGridSpec(
            num_scalar_prefetch=0,
            grid=grid,
            in_specs=[
                pl.BlockSpec((tm, input_dim), lambda i: (i, 0)),  # x tile
                resident(w1p),
                resident(w2p),
                resident(w3p),
                resident(bias),
            ],
            out_specs=pl.BlockSpec((tm, LANE), lambda i: (i, 0)),
        ),
        compiler_params=pltpu.CompilerParams(
            dimension_semantics=("parallel",),   # megacore split on v7x
        ),
        cost_estimate=pl.CostEstimate(
            flops=flops, transcendentals=0, bytes_accessed=bytes_accessed),
    )(x_bf, w1p, w2p, w3p, bias)

    return out[:batch, :output_dim]


def init_params(key, input_dim, hidden_dim, output_dim):
    """Deterministic init mimicking torch.nn.Linear (uniform +/- 1/sqrt(fan_in)),
    stored as [in, out] so the kernel does x @ W."""
    ks = jax.random.split(key, 6)

    def linear(kw, kb, fan_in, fan_out):
        bound = 1.0 / jnp.sqrt(jnp.asarray(fan_in, jnp.float32))
        w = jax.random.uniform(kw, (fan_in, fan_out), jnp.float32, -bound, bound)
        b = jax.random.uniform(kb, (1, fan_out), jnp.float32, -bound, bound)
        return w, b

    w1, b1 = linear(ks[0], ks[1], input_dim, hidden_dim)
    w2, b2 = linear(ks[2], ks[3], hidden_dim, hidden_dim)
    w3, b3 = linear(ks[4], ks[5], hidden_dim, output_dim)
    return w1, b1, w2, b2, w3, b3


if __name__ == "__main__":
    batch = 8
    input_dim = 16      # e.g. observation/state dimension
    hidden_dim = 64     # fixed by the module definition
    output_dim = 4      # e.g. number of discrete actions

    key = jax.random.PRNGKey(0)
    k_x, k_p = jax.random.split(key)

    x = jax.random.normal(k_x, (batch, input_dim), dtype=jnp.float32)
    params = init_params(k_p, input_dim, hidden_dim, output_dim)

    q_values = dqn_forward(x, *params)
    q_values = jax.block_until_ready(q_values)
    assert q_values.shape == (batch, output_dim)

    # Reference 1: identical bf16-operand / f32-accumulate math (tight check).
    w1, b1, w2, b2, w3, b3 = params

    def mm(a, w):
        return jnp.dot(a.astype(jnp.bfloat16), w.astype(jnp.bfloat16),
                       preferred_element_type=jnp.float32)

    ref = jnp.maximum(mm(x, w1) + b1, 0.0)
    ref = jnp.maximum(mm(ref, w2) + b2, 0.0)
    ref = mm(ref, w3) + b3
    assert jnp.allclose(q_values, ref, atol=1e-2, rtol=1e-2), \
        float(jnp.max(jnp.abs(q_values - ref)))

    # Reference 2: pure-f32 forward pass (loose sanity check vs bf16 rounding).
    f32 = jnp.maximum(x @ w1 + b1, 0.0)
    f32 = jnp.maximum(f32 @ w2 + b2, 0.0)
    f32 = f32 @ w3 + b3
    assert jnp.allclose(q_values, f32, atol=1e-1, rtol=1e-1)

    print("KERNEL_OK")
</pallas_src>

<mosaic_0001>
module attributes {stable_mosaic.version = 11 : i64} {
  func.func @dqn_kernel(%arg0: i32, %arg1: memref<8x16xbf16, #tpu.memory_space<vmem>>, %arg2: memref<16x128xbf16, #tpu.memory_space<vmem>>, %arg3: memref<128x128xbf16, #tpu.memory_space<vmem>>, %arg4: memref<128x128xbf16, #tpu.memory_space<vmem>>, %arg5: memref<3x128xf32, #tpu.memory_space<vmem>>, %arg6: memref<8x128xf32, #tpu.memory_space<vmem>>) attributes {dimension_semantics = [#tpu.dimension_semantics<parallel>], iteration_bounds = array<i64: 1>, scalar_prefetch = 0 : i64, scratch_operands = 0 : i64, tpu.core_type = #tpu.core_type<tc>, window_params = [{transform_indices = @transform_0, window_bounds = array<i64: 8, 16>}, {pipeline_mode = #tpu.pipeline_mode<synchronous>, transform_indices = @transform_1, window_bounds = array<i64: 16, 128>}, {pipeline_mode = #tpu.pipeline_mode<synchronous>, transform_indices = @transform_2, window_bounds = array<i64: 128, 128>}, {pipeline_mode = #tpu.pipeline_mode<synchronous>, transform_indices = @transform_3, window_bounds = array<i64: 128, 128>}, {pipeline_mode = #tpu.pipeline_mode<synchronous>, transform_indices = @transform_4, window_bounds = array<i64: 3, 128>}, {transform_indices = @transform_5, window_bounds = array<i64: 8, 128>}]} {
    %c0 = arith.constant 0 : index
    %c0_0 = arith.constant 0 : index
    %0 = vector.load %arg1[%c0, %c0_0] : memref<8x16xbf16, #tpu.memory_space<vmem>>, vector<8x16xbf16>
    %c0_1 = arith.constant 0 : index
    %c0_2 = arith.constant 0 : index
    %1 = vector.load %arg2[%c0_1, %c0_2] : memref<16x128xbf16, #tpu.memory_space<vmem>>, vector<16x128xbf16>
    %cst = arith.constant dense<0.000000e+00> : vector<8x128xf32>
    %2 = tpu.matmul %0, %1, %cst {dimension_numbers = #tpu.dot_dimension_numbers<[1], [0], [0], [1], [0, 0, 1, 1], [], []>} : vector<8x16xbf16>, vector<16x128xbf16>, vector<8x128xf32> -> vector<8x128xf32>
    %c0_3 = arith.constant 0 : index
    %c0_4 = arith.constant 0 : index
    %3 = vector.load %arg5[%c0_3, %c0_4] : memref<3x128xf32, #tpu.memory_space<vmem>>, vector<1x128xf32>
    %4 = vector.broadcast %3 : vector<1x128xf32> to vector<8x128xf32>
    %5 = arith.addf %2, %4 : vector<8x128xf32>
    %cst_5 = arith.constant 0.000000e+00 : f32
    %6 = vector.broadcast %cst_5 : f32 to vector<8x128xf32>
    %7 = arith.maximumf %5, %6 : vector<8x128xf32>
    %8 = arith.truncf %7 : vector<8x128xf32> to vector<8x128xbf16>
    %c0_6 = arith.constant 0 : index
    %c0_7 = arith.constant 0 : index
    %9 = vector.load %arg3[%c0_6, %c0_7] : memref<128x128xbf16, #tpu.memory_space<vmem>>, vector<128x128xbf16>
    %cst_8 = arith.constant dense<0.000000e+00> : vector<8x128xf32>
    %10 = tpu.matmul %8, %9, %cst_8 {dimension_numbers = #tpu.dot_dimension_numbers<[1], [0], [0], [1], [0, 0, 1, 1], [], []>} : vector<8x128xbf16>, vector<128x128xbf16>, vector<8x128xf32> -> vector<8x128xf32>
    %c1 = arith.constant 1 : index
    %c0_9 = arith.constant 0 : index
    %11 = vector.load %arg5[%c1, %c0_9] : memref<3x128xf32, #tpu.memory_space<vmem>>, vector<1x128xf32>
    %12 = vector.broadcast %11 : vector<1x128xf32> to vector<8x128xf32>
    %13 = arith.addf %10, %12 : vector<8x128xf32>
    %cst_10 = arith.constant 0.000000e+00 : f32
    %14 = vector.broadcast %cst_10 : f32 to vector<8x128xf32>
    %15 = arith.maximumf %13, %14 : vector<8x128xf32>
    %16 = arith.truncf %15 : vector<8x128xf32> to vector<8x128xbf16>
    %c0_11 = arith.constant 0 : index
    %c0_12 = arith.constant 0 : index
    %17 = vector.load %arg4[%c0_11, %c0_12] : memref<128x128xbf16, #tpu.memory_space<vmem>>, vector<128x128xbf16>
    %cst_13 = arith.constant dense<0.000000e+00> : vector<8x128xf32>
    %18 = tpu.matmul %16, %17, %cst_13 {dimension_numbers = #tpu.dot_dimension_numbers<[1], [0], [0], [1], [0, 0, 1, 1], [], []>} : vector<8x128xbf16>, vector<128x128xbf16>, vector<8x128xf32> -> vector<8x128xf32>
    %c2 = arith.constant 2 : index
    %c0_14 = arith.constant 0 : index
    %19 = vector.load %arg5[%c2, %c0_14] : memref<3x128xf32, #tpu.memory_space<vmem>>, vector<1x128xf32>
    %20 = vector.broadcast %19 : vector<1x128xf32> to vector<8x128xf32>
    %21 = arith.addf %18, %20 : vector<8x128xf32>
    %c0_15 = arith.constant 0 : index
    %c0_16 = arith.constant 0 : index
    %22 = vector.load %arg6[%c0_15, %c0_16] : memref<8x128xf32, #tpu.memory_space<vmem>>, vector<8x128xf32>
    tpu.vector_store %arg6[%c0_15, %c0_16], %21 {strides = array<i32>} : memref<8x128xf32, #tpu.memory_space<vmem>>, vector<8x128xf32>,
    return
  }
  func.func @transform_0(%arg0: i32) -> (i32, i32) {
    %c0_i32 = arith.constant 0 : i32
    %c0_i32_0 = arith.constant 0 : i32
    return %arg0, %c0_i32 : i32, i32
  }
  func.func @transform_1(%arg0: i32) -> (i32, i32) {
    %c0_i32 = arith.constant 0 : i32
    %c0_i32_0 = arith.constant 0 : i32
    %c0_i32_1 = arith.constant 0 : i32
    return %c0_i32, %c0_i32_0 : i32, i32
  }
  func.func @transform_2(%arg0: i32) -> (i32, i32) {
    %c0_i32 = arith.constant 0 : i32
    %c0_i32_0 = arith.constant 0 : i32
    %c0_i32_1 = arith.constant 0 : i32
    return %c0_i32, %c0_i32_0 : i32, i32
  }
  func.func @transform_3(%arg0: i32) -> (i32, i32) {
    %c0_i32 = arith.constant 0 : i32
    %c0_i32_0 = arith.constant 0 : i32
    %c0_i32_1 = arith.constant 0 : i32
    return %c0_i32, %c0_i32_0 : i32, i32
  }
  func.func @transform_4(%arg0: i32) -> (i32, i32) {
    %c0_i32 = arith.constant 0 : i32
    %c0_i32_0 = arith.constant 0 : i32
    %c0_i32_1 = arith.constant 0 : i32
    return %c0_i32, %c0_i32_0 : i32, i32
  }
  func.func @transform_5(%arg0: i32) -> (i32, i32) {
    %c0_i32 = arith.constant 0 : i32
    %c0_i32_0 = arith.constant 0 : i32
    return %arg0, %c0_i32 : i32, i32
  }
}

</mosaic_0001>

<bundles_post_ra>
// kernel: dqn_forward.1
= control target key start
LH: loop header
LB: loop body
LE: loop exit
PB: predicated region body
PF: predicated region fallthrough
CT: control target
= control target key end

     0   :  { %v412_v0 = vmov 0.0   ;;  %vm413_vm0 = vmmov 0   ;;  %vm35_vm1 = vcmask 130048   ;;  %s530_s1 = inlined_call_operand.vmem [shape: bf16[16,128], index: 1, kind: input, shape index: {}]   ;;  %s531_s0 = inlined_call_operand.vmem [shape: bf16[8,16], index: 0, kind: input, shape index: {}]   ;;  %s532_s2 = inlined_call_operand.vmem [shape: bf16[128,128], index: 2, kind: input, shape index: {}]   ;;  %s533_s3 = inlined_call_operand.vmem [shape: bf16[128,128], index: 3, kind: input, shape index: {}]   ;;  %s534_s4 = inlined_call_operand.vmem [shape: f32[3,128], index: 4, kind: input, shape index: {}]   ;;  %s535_s5 = inlined_call_operand.vmem [shape: f32[8,128], index: 5, kind: output, shape index: {}]  }
   0x1   :  { %347 = vmatprep.subr.bf16.mxu0 %v412_v0  ;;  %v395_v1 = vld [vmem:[%s530_s1] sm:$0xff]   ;;  %349 = vmatprep.mubr.msk.bf16.mxu0 %vm413_vm0, %v412_v0  ;;  %v397_v4 = vld [vmem:[%s532_s2 + $0x8] sm:$0xff]   ;;  %v398_v5 = vld [vmem:[%s532_s2 + $0x10] sm:$0xff]  }
   0x2   :  { %v21_v2 = vld [vmem:[%s531_s0] sm:$0xf]  ;;  %353 = vmatprep.subr.bf16.mxu1 %v412_v0  ;;  %369 = vmatprep.mubr.msk.bf16.mxu1 %vm413_vm0, %v412_v0  ;;  %v399_v6 = vld [vmem:[%s532_s2 + $0x18] sm:$0xff]   ;;  %v401_v8 = vld [vmem:[%s532_s2 + $0x28] sm:$0xff]  }
   0x3   :  { %348 = vmatpush3.bf16.msra.mxu0 %v395_v1  ;;  %v396_v3 = vld [vmem:[%s532_s2] sm:$0xff]   ;;  %v402_v9 = vld [vmem:[%s532_s2 + $0x30] sm:$0xff]   ;;  %v403_v10 = vld [vmem:[%s532_s2 + $0x38] sm:$0xff]  }
   0x4   :  { %373 = vmatprep.subr.bf16.mxu0 %v412_v0  ;;  %354 = vmatpush3.bf16.msra.mxu1 %v396_v3  ;;  %v400_v7 = vld [vmem:[%s532_s2 + $0x20] sm:$0xff]   ;;  %v405_v12 = vld [vmem:[%s533_s3 + $0x8] sm:$0xff]   ;;  %v406_v13 = vld [vmem:[%s533_s3 + $0x10] sm:$0xff]  }
   0x5   :  { %355 = vmatprep.subr.bf16.mxu1 %v412_v0  ;;  %v404_v11 = vld [vmem:[%s533_s3] sm:$0xff]   ;;  %v407_v14 = vld [vmem:[%s533_s3 + $0x18] sm:$0xff]   ;;  %v409_v16 = vld [vmem:[%s533_s3 + $0x28] sm:$0xff]  }
   0x6   :  { %350 = vmatmul.mubr.msk.bf16.vlgmr.msra.gmra.mrb[0].mxu0 %vm35_vm1, %v21_v2  ;;  %v408_v15 = vld [vmem:[%s533_s3 + $0x20] sm:$0xff]   ;;  %v410_v25 = vld [vmem:[%s533_s3 + $0x30] sm:$0xff]   ;;  %v411_v26 = vld [vmem:[%s533_s3 + $0x38] sm:$0xff]  }
   0x7   :  { %389 = vmatprep.mubr.msk.bf16.mxu0 %vm413_vm0, %v412_v0  ;;  %374 = vmatpush3.bf16.msra.mxu0 %v404_v11  ;;  %v306_v17 = vld [vmem:[%s534_s4] ss:$0 sm:$0xff]  ;;  %v309_v27 = vld [vmem:[%s534_s4 + $0x1] ss:$0 sm:$0xff]  ;;  %v318_v35 = vld [vmem:[%s534_s4 + $0x2] ss:$0 sm:$0xff] }
   0x8   :  { %356 = vmatpush3.bf16.msra.mxu1 %v397_v4  ;;  %375 = vmatprep.subr.bf16.mxu0 %v412_v0 }
   0x9   :  { %357 = vmatprep.subr.bf16.mxu1 %v412_v0 }
   0xb   :  { %376 = vmatpush3.bf16.msra.mxu0 %v405_v12 }
   0xc   :  { %358 = vmatpush3.bf16.msra.mxu1 %v398_v5  ;;  %377 = vmatprep.subr.bf16.mxu0 %v412_v0 }
   0xd   :  { %359 = vmatprep.subr.bf16.mxu1 %v412_v0 }
   0xf   :  { %378 = vmatpush3.bf16.msra.mxu0 %v406_v13 }
  0x10   :  { %360 = vmatpush3.bf16.msra.mxu1 %v399_v6  ;;  %379 = vmatprep.subr.bf16.mxu0 %v412_v0 }
  0x11   :  { %361 = vmatprep.subr.bf16.mxu1 %v412_v0 }
  0x13   :  { %380 = vmatpush3.bf16.msra.mxu0 %v407_v14 }
  0x14   :  { %362 = vmatpush3.bf16.msra.mxu1 %v400_v7  ;;  %381 = vmatprep.subr.bf16.mxu0 %v412_v0 }
  0x15   :  { %363 = vmatprep.subr.bf16.mxu1 %v412_v0 }
  0x17   :  { %382 = vmatpush3.bf16.msra.mxu0 %v408_v15 }
  0x18   :  { %364 = vmatpush3.bf16.msra.mxu1 %v401_v8  ;;  %383 = vmatprep.subr.bf16.mxu0 %v412_v0 }
  0x19   :  { %365 = vmatprep.subr.bf16.mxu1 %v412_v0 }
  0x1b   :  { %384 = vmatpush3.bf16.msra.mxu0 %v409_v16 }
  0x1c   :  { %366 = vmatpush3.bf16.msra.mxu1 %v402_v9  ;;  %385 = vmatprep.subr.bf16.mxu0 %v412_v0 }
  0x1d   :  { %367 = vmatprep.subr.bf16.mxu1 %v412_v0 }
  0x1f   :  { %386 = vmatpush3.bf16.msra.mxu0 %v410_v25 }
  0x20   :  { %368 = vmatpush3.bf16.msra.mxu1 %v403_v10  ;;  %387 = vmatprep.subr.bf16.mxu0 %v412_v0 }
  0x23   :  { %388 = vmatpush3.bf16.msra.mxu0 %v411_v26 }
  0xd9   :  { %v73_v18 = vpop.f32.mrb[0].mxu0 }
  0xda   :  { %v74_v19 = vadd.f32 %v306_v17, %v73_v18  ;;  %v351_v20 = vpop.f32.mrb[1].mxu0 }
  0xdb   :  { %v76_v21 = vpop.f32.mrb[2].mxu0 }
  0xdc   :  { %v79_v22 = vmax.f32 %v74_v19, 0.0  ;;  %v352_v23 = vpop.f32.mrb[3].mxu0 }
  0xde   :  { %v80_v24 = vpack.c.bf16 %v79_v22, %v79_v22 }
  0xe0   :  { %370 = vmatmul.mubr.bf16.vlgmr.msra.gmra.mrb[0].mxu1 %v80_v24 }
 0x1b3   :  { %v184_v28 = vpop.f32.mrb[0].mxu1 }
 0x1b4   :  { %v185_v29 = vadd.f32 %v309_v27, %v184_v28  ;;  %v371_v30 = vpop.f32.mrb[1].mxu1 }
 0x1b5   :  { %v187_v31 = vpop.f32.mrb[2].mxu1 }
 0x1b6   :  { %v190_v32 = vmax.f32 %v185_v29, 0.0  ;;  %v372_v33 = vpop.f32.mrb[3].mxu1 }
 0x1b8   :  { %v191_v34 = vpack.c.bf16 %v190_v32, %v190_v32 }
 0x1ba   :  { %390 = vmatmul.mubr.bf16.vlgmr.msra.gmra.mrb[4].mxu0 %v191_v34 }
 0x28d   :  { %v295_v36 = vpop.f32.mrb[4].mxu0 }
 0x28e   :  { %v296_v37 = vadd.f32 %v318_v35, %v295_v36  ;;  %v391_v38 = vpop.f32.mrb[5].mxu0 }
 0x28f   :  { %v298_v39 = vpop.f32.mrb[6].mxu0 }
 0x290   :  { %301 = vst [vmem:[%s535_s5] sm:$0xff] %v296_v37  ;;  %v392_v40 = vpop.f32.mrb[7].mxu0 }

</bundles_post_ra>
